<compile_context>
chip_gen: v7x
topology: tpu7x:2x2x1
jax: 0.10.0
libtpu: 0.0.40
codegen_flags: <defaults>
</compile_context>

<pallas_src>
import functools

import jax
import jax.numpy as jnp
from jax.experimental import pallas as pl
from jax.experimental.pallas import tpu as pltpu

F_IN, HID, F_OUT = 3, 16, 8
_CHUNK = 512  # in-kernel lane chunk: live intermediates ~25 vregs << 64-vreg file


def _round_up(a, b):
    return ((a + b - 1) // b) * b


def mlp_softmax_kernel(x_ref, w1_ref, b1_ref, w2_ref, b2_ref, o_ref, *, chunk):
    cdt = x_ref.dtype                                   # compute dtype = streamed x dtype
    w1 = w1_ref[...].astype(cdt)                        # (16, 3)  VMEM-resident
    w2 = w2_ref[...].astype(cdt)                        # (8, 16)  VMEM-resident
    # Bias broadcasts hoisted out of the chunk loop (computed once per tile).
    h0 = jnp.broadcast_to(b1_ref[...].astype(cdt), (HID, chunk))
    z0 = jnp.broadcast_to(b2_ref[...].astype(cdt), (F_OUT, chunk))
    num_chunks = x_ref.shape[-1] // chunk               # static

    @pl.loop(0, num_chunks)
    def _(c):
        start = pl.multiple_of(c * chunk, chunk)        # chunk is a multiple of 128
        x = x_ref[:, pl.ds(start, chunk)]               # (3, chunk), batch on lanes

        # ---- Linear(3, 16) + ReLU: 3 broadcast FMAs on the VPU (no MXU). ----
        h = h0
        for k in range(F_IN):                           # static unroll (3)
            h = h + w1[:, k:k + 1] * x[k:k + 1, :]
        h = jnp.maximum(h, 0.0)

        # ---- Linear(16, 8): 16 broadcast FMAs on the VPU. ----
        z = z0
        for k in range(HID):                            # static unroll (16)
            z = z + w2[:, k:k + 1] * h[k:k + 1, :]

        # ---- Softmax over the 8-feature sublane axis (per lane/sample). ----
        zf = z.astype(jnp.float32)                      # stability + exact normalize
        m = jnp.max(zf, axis=0, keepdims=True)
        e = jnp.exp(zf - m)
        inv = 1.0 / jnp.sum(e, axis=0, keepdims=True)   # exact divide, only (1, chunk)
        o_ref[:, pl.ds(start, chunk)] = (e * inv).astype(o_ref.dtype)


@functools.partial(jax.jit, static_argnames=("tile_n", "compute_dtype"))
def linear_model_forward(x, w1, b1, w2, b2, *, tile_n=16384,
                         compute_dtype=jnp.float32):
    """x: (N, 3); PyTorch-layout params w1:(16,3), b1:(16,), w2:(8,16), b2:(8,).

    Returns softmax probabilities of shape (N, 8) in float32.
    compute_dtype=jnp.bfloat16 is recommended on v6e/v7x (f32 default is
    required for full accuracy and for v5e, which has no bf16 VALU/EUP)."""
    n = x.shape[0]
    tile_n = max(_round_up(tile_n, _CHUNK), _CHUNK)
    n_pad = _round_up(max(n, 1), _CHUNK)                # pad batch to a chunk only
    tile = min(tile_n, n_pad)
    # Keep >=2 grid steps when there is enough work so dimension_semantics
    # ("parallel",) can shard batch tiles across v7x's two TensorCores.
    if n_pad >= 2 * _CHUNK:
        tile = min(tile, _round_up(-(-n_pad // 2), _CHUNK))
    grid_steps = pl.cdiv(n_pad, tile)                   # partial edge block is masked
    chunk = min(_CHUNK, tile)

    # Layout plumbing (kept minimal): transpose + pad to [3, N_pad]; x is streamed
    # in the compute dtype so bf16 mode also halves input HBM bytes.
    x_t = jnp.pad(x.astype(compute_dtype).T, ((0, 0), (0, n_pad - n)))
    b1c = b1.reshape(HID, 1).astype(jnp.float32)
    b2c = b2.reshape(F_OUT, 1).astype(jnp.float32)

    out_t = pl.pallas_call(
        functools.partial(mlp_softmax_kernel, chunk=chunk),
        out_shape=jax.ShapeDtypeStruct((F_OUT, n_pad), jnp.float32),
        grid=(grid_steps,),
        in_specs=[
            pl.BlockSpec((F_IN, tile), lambda i: (0, i)),    # x tile (streamed)
            pl.BlockSpec((HID, F_IN), lambda i: (0, 0)),     # w1 resident
            pl.BlockSpec((HID, 1), lambda i: (0, 0)),        # b1 resident
            pl.BlockSpec((F_OUT, HID), lambda i: (0, 0)),    # w2 resident
            pl.BlockSpec((F_OUT, 1), lambda i: (0, 0)),      # b2 resident
        ],
        out_specs=pl.BlockSpec((F_OUT, tile), lambda i: (0, i)),  # lane-dense slab
        compiler_params=pltpu.CompilerParams(
            dimension_semantics=("parallel",),               # batch tiles over TCs
        ),
    )(x_t, w1.astype(jnp.float32), b1c, w2.astype(jnp.float32), b2c)

    return out_t[:, :n].T                                    # (N, 8)


def init_params(key):
    # nn.Linear-style uniform(-1/sqrt(fan_in), +) init, PyTorch storage layout:
    # weight[out_features, in_features], bias[out_features].
    k1, k2, k3, k4 = jax.random.split(key, 4)
    lim1 = 1.0 / jnp.sqrt(3.0)
    lim2 = 1.0 / jnp.sqrt(16.0)
    w1 = jax.random.uniform(k1, (HID, F_IN), jnp.float32, -lim1, lim1)
    b1 = jax.random.uniform(k2, (HID,), jnp.float32, -lim1, lim1)
    w2 = jax.random.uniform(k3, (F_OUT, HID), jnp.float32, -lim2, lim2)
    b2 = jax.random.uniform(k4, (F_OUT,), jnp.float32, -lim2, lim2)
    return w1, b1, w2, b2


def reference(x, w1, b1, w2, b2):
    h = jnp.maximum(x @ w1.T + b1, 0.0)
    logits = h @ w2.T + b2
    return jax.nn.softmax(logits, axis=1)


if __name__ == "__main__":
    key = jax.random.PRNGKey(0)
    k_x, k_p, k_big = jax.random.split(key, 3)
    w1, b1, w2, b2 = init_params(k_p)

    # Small shape matching the module: batch=8, in_features=3.
    x = jax.random.normal(k_x, (8, 3), jnp.float32)
    out = jax.block_until_ready(linear_model_forward(x, w1, b1, w2, b2))
    ref = reference(x, w1, b1, w2, b2)
    assert out.shape == (8, 8)
    assert jnp.allclose(out, ref, atol=1e-3, rtol=1e-3)
    assert jnp.allclose(jnp.sum(out, axis=1), 1.0, atol=1e-4)

    # Exercise the multi-tile / multi-chunk / partial-edge-block path.
    xb = jax.random.normal(k_big, (1500, 3), jnp.float32)
    outb = jax.block_until_ready(linear_model_forward(xb, w1, b1, w2, b2))
    refb = reference(xb, w1, b1, w2, b2)
    assert outb.shape == (1500, 8)
    assert jnp.allclose(outb, refb, atol=1e-3, rtol=1e-3)

    print("KERNEL_OK")
</pallas_src>

<mosaic_0001>
module attributes {stable_mosaic.version = 11 : i64} {
  func.func @mlp_softmax_kernel(%arg0: i32, %arg1: memref<3x512xf32, #tpu.memory_space<vmem>>, %arg2: memref<16x3xf32, #tpu.memory_space<vmem>>, %arg3: memref<16x1xf32, #tpu.memory_space<vmem>>, %arg4: memref<8x16xf32, #tpu.memory_space<vmem>>, %arg5: memref<8x1xf32, #tpu.memory_space<vmem>>, %arg6: memref<8x512xf32, #tpu.memory_space<vmem>>) attributes {dimension_semantics = [#tpu.dimension_semantics<parallel>], iteration_bounds = array<i64: 1>, scalar_prefetch = 0 : i64, scratch_operands = 0 : i64, tpu.core_type = #tpu.core_type<tc>, window_params = [{transform_indices = @transform_0, window_bounds = array<i64: 3, 512>}, {pipeline_mode = #tpu.pipeline_mode<synchronous>, transform_indices = @transform_1, window_bounds = array<i64: 16, 3>}, {pipeline_mode = #tpu.pipeline_mode<synchronous>, transform_indices = @transform_2, window_bounds = array<i64: 16, 1>}, {pipeline_mode = #tpu.pipeline_mode<synchronous>, transform_indices = @transform_3, window_bounds = array<i64: 8, 16>}, {pipeline_mode = #tpu.pipeline_mode<synchronous>, transform_indices = @transform_4, window_bounds = array<i64: 8, 1>}, {transform_indices = @transform_5, window_bounds = array<i64: 8, 512>}]} {
    %c0 = arith.constant 0 : index
    %c0_0 = arith.constant 0 : index
    %0 = vector.load %arg2[%c0, %c0_0] : memref<16x3xf32, #tpu.memory_space<vmem>>, vector<16x3xf32>
    %c0_1 = arith.constant 0 : index
    %c0_2 = arith.constant 0 : index
    %1 = vector.load %arg4[%c0_1, %c0_2] : memref<8x16xf32, #tpu.memory_space<vmem>>, vector<8x16xf32>
    %c0_3 = arith.constant 0 : index
    %c0_4 = arith.constant 0 : index
    %2 = vector.load %arg3[%c0_3, %c0_4] : memref<16x1xf32, #tpu.memory_space<vmem>>, vector<16x1xf32>
    %3 = vector.shape_cast %2 : vector<16x1xf32> to vector<16x1xf32>
    %4 = vector.broadcast %3 : vector<16x1xf32> to vector<16x512xf32>
    %c0_5 = arith.constant 0 : index
    %c0_6 = arith.constant 0 : index
    %5 = vector.load %arg5[%c0_5, %c0_6] : memref<8x1xf32, #tpu.memory_space<vmem>>, vector<8x1xf32>
    %6 = vector.shape_cast %5 : vector<8x1xf32> to vector<8x1xf32>
    %7 = vector.broadcast %6 : vector<8x1xf32> to vector<8x512xf32>
    %c0_i32 = arith.constant 0 : i32
    %c1_i32 = arith.constant 1 : i32
    %8 = arith.muli %c0_i32, %c1_i32 : i32
    %c0_i32_7 = arith.constant 0 : i32
    %9 = arith.addi %c0_i32_7, %8 : i32
    %c512_i32 = arith.constant 512 : i32
    %10 = arith.muli %9, %c512_i32 : i32
    %11 = tpu.assume_multiple %10, 512 : i32
    %c0_8 = arith.constant 0 : index
    %12 = arith.index_cast %11 : i32 to index
    %13 = vector.load %arg1[%c0_8, %12] : memref<3x512xf32, #tpu.memory_space<vmem>>, vector<3x512xf32>
    %14 = vector.extract_strided_slice %0 {offsets = [0, 0], sizes = [16, 1], strides = [1, 1]} : vector<16x3xf32> to vector<16x1xf32>
    %15 = vector.extract_strided_slice %13 {offsets = [0, 0], sizes = [1, 512], strides = [1, 1]} : vector<3x512xf32> to vector<1x512xf32>
    %16 = vector.broadcast %14 : vector<16x1xf32> to vector<16x512xf32>
    %17 = vector.broadcast %15 : vector<1x512xf32> to vector<16x512xf32>
    %18 = arith.mulf %16, %17 : vector<16x512xf32>
    %19 = arith.addf %4, %18 : vector<16x512xf32>
    %20 = vector.extract_strided_slice %0 {offsets = [0, 1], sizes = [16, 1], strides = [1, 1]} : vector<16x3xf32> to vector<16x1xf32>
    %21 = vector.extract_strided_slice %13 {offsets = [1, 0], sizes = [1, 512], strides = [1, 1]} : vector<3x512xf32> to vector<1x512xf32>
    %22 = vector.broadcast %20 : vector<16x1xf32> to vector<16x512xf32>
    %23 = vector.broadcast %21 : vector<1x512xf32> to vector<16x512xf32>
    %24 = arith.mulf %22, %23 : vector<16x512xf32>
    %25 = arith.addf %19, %24 : vector<16x512xf32>
    %26 = vector.extract_strided_slice %0 {offsets = [0, 2], sizes = [16, 1], strides = [1, 1]} : vector<16x3xf32> to vector<16x1xf32>
    %27 = vector.extract_strided_slice %13 {offsets = [2, 0], sizes = [1, 512], strides = [1, 1]} : vector<3x512xf32> to vector<1x512xf32>
    %28 = vector.broadcast %26 : vector<16x1xf32> to vector<16x512xf32>
    %29 = vector.broadcast %27 : vector<1x512xf32> to vector<16x512xf32>
    %30 = arith.mulf %28, %29 : vector<16x512xf32>
    %31 = arith.addf %25, %30 : vector<16x512xf32>
    %cst = arith.constant 0.000000e+00 : f32
    %32 = vector.broadcast %cst : f32 to vector<16x512xf32>
    %33 = arith.maximumf %31, %32 : vector<16x512xf32>
    %34 = vector.extract_strided_slice %1 {offsets = [0, 0], sizes = [8, 1], strides = [1, 1]} : vector<8x16xf32> to vector<8x1xf32>
    %35 = vector.extract_strided_slice %33 {offsets = [0, 0], sizes = [1, 512], strides = [1, 1]} : vector<16x512xf32> to vector<1x512xf32>
    %36 = vector.broadcast %34 : vector<8x1xf32> to vector<8x512xf32>
    %37 = vector.broadcast %35 : vector<1x512xf32> to vector<8x512xf32>
    %38 = arith.mulf %36, %37 : vector<8x512xf32>
    %39 = arith.addf %7, %38 : vector<8x512xf32>
    %40 = vector.extract_strided_slice %1 {offsets = [0, 1], sizes = [8, 1], strides = [1, 1]} : vector<8x16xf32> to vector<8x1xf32>
    %41 = vector.extract_strided_slice %33 {offsets = [1, 0], sizes = [1, 512], strides = [1, 1]} : vector<16x512xf32> to vector<1x512xf32>
    %42 = vector.broadcast %40 : vector<8x1xf32> to vector<8x512xf32>
    %43 = vector.broadcast %41 : vector<1x512xf32> to vector<8x512xf32>
    %44 = arith.mulf %42, %43 : vector<8x512xf32>
    %45 = arith.addf %39, %44 : vector<8x512xf32>
    %46 = vector.extract_strided_slice %1 {offsets = [0, 2], sizes = [8, 1], strides = [1, 1]} : vector<8x16xf32> to vector<8x1xf32>
    %47 = vector.extract_strided_slice %33 {offsets = [2, 0], sizes = [1, 512], strides = [1, 1]} : vector<16x512xf32> to vector<1x512xf32>
    %48 = vector.broadcast %46 : vector<8x1xf32> to vector<8x512xf32>
    %49 = vector.broadcast %47 : vector<1x512xf32> to vector<8x512xf32>
    %50 = arith.mulf %48, %49 : vector<8x512xf32>
    %51 = arith.addf %45, %50 : vector<8x512xf32>
    %52 = vector.extract_strided_slice %1 {offsets = [0, 3], sizes = [8, 1], strides = [1, 1]} : vector<8x16xf32> to vector<8x1xf32>
    %53 = vector.extract_strided_slice %33 {offsets = [3, 0], sizes = [1, 512], strides = [1, 1]} : vector<16x512xf32> to vector<1x512xf32>
    %54 = vector.broadcast %52 : vector<8x1xf32> to vector<8x512xf32>
    %55 = vector.broadcast %53 : vector<1x512xf32> to vector<8x512xf32>
    %56 = arith.mulf %54, %55 : vector<8x512xf32>
    %57 = arith.addf %51, %56 : vector<8x512xf32>
    %58 = vector.extract_strided_slice %1 {offsets = [0, 4], sizes = [8, 1], strides = [1, 1]} : vector<8x16xf32> to vector<8x1xf32>
    %59 = vector.extract_strided_slice %33 {offsets = [4, 0], sizes = [1, 512], strides = [1, 1]} : vector<16x512xf32> to vector<1x512xf32>
    %60 = vector.broadcast %58 : vector<8x1xf32> to vector<8x512xf32>
    %61 = vector.broadcast %59 : vector<1x512xf32> to vector<8x512xf32>
    %62 = arith.mulf %60, %61 : vector<8x512xf32>
    %63 = arith.addf %57, %62 : vector<8x512xf32>
    %64 = vector.extract_strided_slice %1 {offsets = [0, 5], sizes = [8, 1], strides = [1, 1]} : vector<8x16xf32> to vector<8x1xf32>
    %65 = vector.extract_strided_slice %33 {offsets = [5, 0], sizes = [1, 512], strides = [1, 1]} : vector<16x512xf32> to vector<1x512xf32>
    %66 = vector.broadcast %64 : vector<8x1xf32> to vector<8x512xf32>
    %67 = vector.broadcast %65 : vector<1x512xf32> to vector<8x512xf32>
    %68 = arith.mulf %66, %67 : vector<8x512xf32>
    %69 = arith.addf %63, %68 : vector<8x512xf32>
    %70 = vector.extract_strided_slice %1 {offsets = [0, 6], sizes = [8, 1], strides = [1, 1]} : vector<8x16xf32> to vector<8x1xf32>
    %71 = vector.extract_strided_slice %33 {offsets = [6, 0], sizes = [1, 512], strides = [1, 1]} : vector<16x512xf32> to vector<1x512xf32>
    %72 = vector.broadcast %70 : vector<8x1xf32> to vector<8x512xf32>
    %73 = vector.broadcast %71 : vector<1x512xf32> to vector<8x512xf32>
    %74 = arith.mulf %72, %73 : vector<8x512xf32>
    %75 = arith.addf %69, %74 : vector<8x512xf32>
    %76 = vector.extract_strided_slice %1 {offsets = [0, 7], sizes = [8, 1], strides = [1, 1]} : vector<8x16xf32> to vector<8x1xf32>
    %77 = vector.extract_strided_slice %33 {offsets = [7, 0], sizes = [1, 512], strides = [1, 1]} : vector<16x512xf32> to vector<1x512xf32>
    %78 = vector.broadcast %76 : vector<8x1xf32> to vector<8x512xf32>
    %79 = vector.broadcast %77 : vector<1x512xf32> to vector<8x512xf32>
    %80 = arith.mulf %78, %79 : vector<8x512xf32>
    %81 = arith.addf %75, %80 : vector<8x512xf32>
    %82 = vector.extract_strided_slice %1 {offsets = [0, 8], sizes = [8, 1], strides = [1, 1]} : vector<8x16xf32> to vector<8x1xf32>
    %83 = vector.extract_strided_slice %33 {offsets = [8, 0], sizes = [1, 512], strides = [1, 1]} : vector<16x512xf32> to vector<1x512xf32>
    %84 = vector.broadcast %82 : vector<8x1xf32> to vector<8x512xf32>
    %85 = vector.broadcast %83 : vector<1x512xf32> to vector<8x512xf32>
    %86 = arith.mulf %84, %85 : vector<8x512xf32>
    %87 = arith.addf %81, %86 : vector<8x512xf32>
    %88 = vector.extract_strided_slice %1 {offsets = [0, 9], sizes = [8, 1], strides = [1, 1]} : vector<8x16xf32> to vector<8x1xf32>
    %89 = vector.extract_strided_slice %33 {offsets = [9, 0], sizes = [1, 512], strides = [1, 1]} : vector<16x512xf32> to vector<1x512xf32>
    %90 = vector.broadcast %88 : vector<8x1xf32> to vector<8x512xf32>
    %91 = vector.broadcast %89 : vector<1x512xf32> to vector<8x512xf32>
    %92 = arith.mulf %90, %91 : vector<8x512xf32>
    %93 = arith.addf %87, %92 : vector<8x512xf32>
    %94 = vector.extract_strided_slice %1 {offsets = [0, 10], sizes = [8, 1], strides = [1, 1]} : vector<8x16xf32> to vector<8x1xf32>
    %95 = vector.extract_strided_slice %33 {offsets = [10, 0], sizes = [1, 512], strides = [1, 1]} : vector<16x512xf32> to vector<1x512xf32>
    %96 = vector.broadcast %94 : vector<8x1xf32> to vector<8x512xf32>
    %97 = vector.broadcast %95 : vector<1x512xf32> to vector<8x512xf32>
    %98 = arith.mulf %96, %97 : vector<8x512xf32>
    %99 = arith.addf %93, %98 : vector<8x512xf32>
    %100 = vector.extract_strided_slice %1 {offsets = [0, 11], sizes = [8, 1], strides = [1, 1]} : vector<8x16xf32> to vector<8x1xf32>
    %101 = vector.extract_strided_slice %33 {offsets = [11, 0], sizes = [1, 512], strides = [1, 1]} : vector<16x512xf32> to vector<1x512xf32>
    %102 = vector.broadcast %100 : vector<8x1xf32> to vector<8x512xf32>
    %103 = vector.broadcast %101 : vector<1x512xf32> to vector<8x512xf32>
    %104 = arith.mulf %102, %103 : vector<8x512xf32>
    %105 = arith.addf %99, %104 : vector<8x512xf32>
    %106 = vector.extract_strided_slice %1 {offsets = [0, 12], sizes = [8, 1], strides = [1, 1]} : vector<8x16xf32> to vector<8x1xf32>
    %107 = vector.extract_strided_slice %33 {offsets = [12, 0], sizes = [1, 512], strides = [1, 1]} : vector<16x512xf32> to vector<1x512xf32>
    %108 = vector.broadcast %106 : vector<8x1xf32> to vector<8x512xf32>
    %109 = vector.broadcast %107 : vector<1x512xf32> to vector<8x512xf32>
    %110 = arith.mulf %108, %109 : vector<8x512xf32>
    %111 = arith.addf %105, %110 : vector<8x512xf32>
    %112 = vector.extract_strided_slice %1 {offsets = [0, 13], sizes = [8, 1], strides = [1, 1]} : vector<8x16xf32> to vector<8x1xf32>
    %113 = vector.extract_strided_slice %33 {offsets = [13, 0], sizes = [1, 512], strides = [1, 1]} : vector<16x512xf32> to vector<1x512xf32>
    %114 = vector.broadcast %112 : vector<8x1xf32> to vector<8x512xf32>
    %115 = vector.broadcast %113 : vector<1x512xf32> to vector<8x512xf32>
    %116 = arith.mulf %114, %115 : vector<8x512xf32>
    %117 = arith.addf %111, %116 : vector<8x512xf32>
    %118 = vector.extract_strided_slice %1 {offsets = [0, 14], sizes = [8, 1], strides = [1, 1]} : vector<8x16xf32> to vector<8x1xf32>
    %119 = vector.extract_strided_slice %33 {offsets = [14, 0], sizes = [1, 512], strides = [1, 1]} : vector<16x512xf32> to vector<1x512xf32>
    %120 = vector.broadcast %118 : vector<8x1xf32> to vector<8x512xf32>
    %121 = vector.broadcast %119 : vector<1x512xf32> to vector<8x512xf32>
    %122 = arith.mulf %120, %121 : vector<8x512xf32>
    %123 = arith.addf %117, %122 : vector<8x512xf32>
    %124 = vector.extract_strided_slice %1 {offsets = [0, 15], sizes = [8, 1], strides = [1, 1]} : vector<8x16xf32> to vector<8x1xf32>
    %125 = vector.extract_strided_slice %33 {offsets = [15, 0], sizes = [1, 512], strides = [1, 1]} : vector<16x512xf32> to vector<1x512xf32>
    %126 = vector.broadcast %124 : vector<8x1xf32> to vector<8x512xf32>
    %127 = vector.broadcast %125 : vector<1x512xf32> to vector<8x512xf32>
    %128 = arith.mulf %126, %127 : vector<8x512xf32>
    %129 = arith.addf %123, %128 : vector<8x512xf32>
    %cst_9 = arith.constant dense<0xFF800000> : vector<512xf32>
    %130 = vector.multi_reduction <maximumf>, %129, %cst_9 [0] : vector<8x512xf32> to vector<512xf32>
    %131 = vector.shape_cast %130 : vector<512xf32> to vector<1x512xf32>
    %132 = vector.broadcast %131 : vector<1x512xf32> to vector<8x512xf32>
    %133 = arith.subf %129, %132 : vector<8x512xf32>
    %134 = math.exp %133 : vector<8x512xf32>
    %cst_10 = arith.constant dense<0.000000e+00> : vector<512xf32>
    %135 = vector.multi_reduction <add>, %134, %cst_10 [0] : vector<8x512xf32> to vector<512xf32>
    %136 = vector.shape_cast %135 : vector<512xf32> to vector<1x512xf32>
    %cst_11 = arith.constant 1.000000e+00 : f32
    %137 = vector.broadcast %cst_11 : f32 to vector<1x512xf32>
    %138 = arith.divf %137, %136 : vector<1x512xf32>
    %139 = vector.broadcast %138 : vector<1x512xf32> to vector<8x512xf32>
    %140 = arith.mulf %134, %139 : vector<8x512xf32>
    %c0_12 = arith.constant 0 : index
    %141 = arith.index_cast %11 : i32 to index
    %142 = vector.load %arg6[%c0_12, %141] : memref<8x512xf32, #tpu.memory_space<vmem>>, vector<8x512xf32>
    tpu.vector_store %arg6[%c0_12, %141], %140 {strides = array<i32>} : memref<8x512xf32, #tpu.memory_space<vmem>>, vector<8x512xf32>,
    %c1_i32_13 = arith.constant 1 : i32
    return
  }
  func.func @transform_0(%arg0: i32) -> (i32, i32) {
    %c0_i32 = arith.constant 0 : i32
    %c0_i32_0 = arith.constant 0 : i32
    return %c0_i32, %arg0 : i32, i32
  }
  func.func @transform_1(%arg0: i32) -> (i32, i32) {
    %c0_i32 = arith.constant 0 : i32
    %c0_i32_0 = arith.constant 0 : i32
    %c0_i32_1 = arith.constant 0 : i32
    return %c0_i32, %c0_i32_0 : i32, i32
  }
  func.func @transform_2(%arg0: i32) -> (i32, i32) {
    %c0_i32 = arith.constant 0 : i32
    %c0_i32_0 = arith.constant 0 : i32
    %c0_i32_1 = arith.constant 0 : i32
    return %c0_i32, %c0_i32_0 : i32, i32
  }
  func.func @transform_3(%arg0: i32) -> (i32, i32) {
    %c0_i32 = arith.constant 0 : i32
    %c0_i32_0 = arith.constant 0 : i32
    %c0_i32_1 = arith.constant 0 : i32
    return %c0_i32, %c0_i32_0 : i32, i32
  }
  func.func @transform_4(%arg0: i32) -> (i32, i32) {
    %c0_i32 = arith.constant 0 : i32
    %c0_i32_0 = arith.constant 0 : i32
    %c0_i32_1 = arith.constant 0 : i32
    return %c0_i32, %c0_i32_0 : i32, i32
  }
  func.func @transform_5(%arg0: i32) -> (i32, i32) {
    %c0_i32 = arith.constant 0 : i32
    %c0_i32_0 = arith.constant 0 : i32
    return %c0_i32, %arg0 : i32, i32
  }
}

</mosaic_0001>

<bundles_post_ra>
// kernel: linear_model_forward.1
= control target key start
LH: loop header
LB: loop body
LE: loop exit
PB: predicated region body
PF: predicated region fallthrough
CT: control target
= control target key end

     0   :  { %v817_v0 = vmov 1   ;;  %v818_v3 = vmov 0   ;;  %v819_v4 = vmov 2   ;;  %v820_v9 = vmov 6   ;;  %s1173_s3 = inlined_call_operand.vmem [shape: f32[8,16], index: 3, kind: input, shape index: {}]   ;;  %s1174_s1 = inlined_call_operand.vmem [shape: f32[16,3], index: 1, kind: input, shape index: {}]   ;;  %s1175_s2 = inlined_call_operand.vmem [shape: f32[16,1], index: 2, kind: input, shape index: {}]   ;;  %s1176_s4 = inlined_call_operand.vmem [shape: f32[8,1], index: 4, kind: input, shape index: {}]   ;;  %s1177_s0 = inlined_call_operand.vmem [shape: f32[3,512], index: 0, kind: input, shape index: {}]   ;;  %s1178_s5 = inlined_call_operand.vmem [shape: f32[8,512], index: 5, kind: output, shape index: {}]  }
   0x1   :  { %783 = vset.pattern.permute.xlu0 %v817_v0  ;;  %780 = vset.pattern.permute.xlu1 %v817_v0  ;;  %v866_v1 = vld [vmem:[%s1173_s3] sm:$0xff]  ;;  %v21_v7 = vld [vmem:[%s1174_s1 + $0x8] sm:$0xff]  ;;  %v821_v10 = vmov 3   ;;  %v822_v11 = vmov 9   ;;  %v823_v12 = vmov 4   ;;  %v824_v13 = vmov 12  }
   0x2   :  { %v20_v2 = vld [vmem:[%s1174_s1] sm:$0xff]  ;;  %265 = vperm.xlu0 %783, %v866_v1   ;;  %v24_v8 = vld [vmem:[%s1175_s2 + $0x8] sm:$0xff]  ;;  %v825_v14 = vmov 5   ;;  %v826_v15 = vmov 15   ;;  %v827_v16 = vmov 7   ;;  %v828_v17 = vmov 8  }
   0x3   :  { %108 = vperm.xlu1 %780, %v20_v2   ;;  %v23_v5 = vld [vmem:[%s1175_s2] sm:$0xff]  ;;  %v829_v18 = vmov 10   ;;  %v830_v19 = vmov 11   ;;  %v831_v20 = vmov 13   ;;  %v832_v21 = vmov 14  }
   0x4   :  { %v35_v6 = vld [vmem:[%s1176_s4] sm:$0xff]  ;;  %v55_v22 = vlaneseq  ;;  %v42_v29 = vld [vmem:[%s1177_s0 + $0x8] sm:$0x77] }
   0x5   :  { %v41_v28 = vld [vmem:[%s1177_s0] sm:$0x77] }
   0x6   :  { %784 = vset.pattern.permute.xlu0 %v818_v3  ;;  %v899_v23 = vshrl.u32 %v55_v22, 7 }
   0x7   :  { %781 = vset.pattern.permute.xlu1 %v819_v4  ;;  %45 = vperm.xlu0 %784, %v20_v2  }
   0x8   :  { %168 = vperm.xlu1 %781, %v20_v2   ;;  %v902_v24 = vsub.s32 0, %v899_v23  ;;  %v905_v25 = vsub.s32 4, %v899_v23  ;;  %v908_v26 = vsub.s32 1, %v899_v23  ;;  %v911_v27 = vsub.s32 5, %v899_v23 }
   0x9   :  { %v924_v34 = vsub.s32 2, %v899_v23  ;;  %v927_v35 = vsub.s32 6, %v899_v23 }
   0xa   :  { %v58_v30 = vrot.slane %v41_v28, %v902_v24  ;;  %v62_v31 = vrot.slane %v41_v28, %v905_v25  ;;  %v66_v32 = vrot.slane %v42_v29, %v902_v24  ;;  %v70_v33 = vrot.slane %v42_v29, %v905_v25 }
   0xb   :  { %27 = vperm.xlu0 %784, %v23_v5   ;;  %v118_v38 = vrot.slane %v41_v28, %v908_v26  ;;  %v122_v39 = vrot.slane %v41_v28, %v911_v27  ;;  %v126_v40 = vrot.slane %v42_v29, %v908_v26  ;;  %v130_v41 = vrot.slane %v42_v29, %v911_v27 }
   0xc   :  { %782 = vset.pattern.permute.xlu1 %v818_v3  ;;  %v78_v42 = vrot.slane %v58_v30, %v902_v24  ;;  %v82_v43 = vrot.slane %v62_v31, %v902_v24  ;;  %v86_v44 = vrot.slane %v66_v32, %v902_v24  ;;  %v90_v45 = vrot.slane %v70_v33, %v902_v24 }
   0xd   :  { %38 = vperm.xlu1 %782, %v35_v6   ;;  %v178_v46 = vrot.slane %v41_v28, %v924_v34  ;;  %v182_v47 = vrot.slane %v41_v28, %v927_v35  ;;  %v186_v48 = vrot.slane %v42_v29, %v924_v34  ;;  %v190_v49 = vrot.slane %v42_v29, %v927_v35 }
   0xe   :  { %v944_v50 = vrot.slane %v118_v38, %v908_v26  ;;  %v947_v51 = vrot.slane %v122_v39, %v908_v26  ;;  %v950_v52 = vrot.slane %v126_v40, %v908_v26  ;;  %v953_v53 = vrot.slane %v130_v41, %v908_v26 }
   0xf   :  { %237 = vperm.xlu0 %784, %v866_v1   ;;  %v956_v60 = vrot.slane %v178_v46, %v924_v34  ;;  %v959_v61 = vrot.slane %v182_v47, %v924_v34  ;;  %v962_v62 = vrot.slane %v186_v48, %v924_v34  ;;  %v965_v63 = vrot.slane %v190_v49, %v924_v34 }
  0x11   :  { %50 = vperm.xlu1 %782, %v21_v7  }
  0x13   :  { %32 = vperm.xlu0 %784, %v24_v8  }
  0x15   :  { %785 = vset.pattern.permute.xlu1 %v819_v4 }
  0x16   :  { %293 = vperm.xlu1 %785, %v866_v1  }
  0x17   :  { %788 = vset.pattern.permute.xlu0 %v819_v4 }
  0x18   :  { %172 = vperm.xlu0 %788, %v21_v7  }
  0x1a   :  { %786 = vset.pattern.permute.xlu1 %v817_v0 }
  0x1b   :  { %112 = vperm.xlu1 %786, %v21_v7  }
  0x1c   :  { %791 = vset.pattern.permute.xlu0 %v820_v9 }
  0x1d   :  { %405 = vperm.xlu0 %791, %v866_v1  }
  0x1f   :  { %787 = vset.pattern.permute.xlu1 %v821_v10 }
  0x20   :  { %321 = vperm.xlu1 %787, %v866_v1  }
  0x21   :  { %794 = vset.pattern.permute.xlu0 %v822_v11 }
  0x22   :  { %489 = vperm.xlu0 %794, %v866_v1  }
  0x24   :  { %789 = vset.pattern.permute.xlu1 %v823_v12 }
  0x25   :  { %349 = vperm.xlu1 %789, %v866_v1  }
  0x26   :  { %797 = vset.pattern.permute.xlu0 %v824_v13 }
  0x27   :  { %573 = vperm.xlu0 %797, %v866_v1  }
  0x29   :  { %790 = vset.pattern.permute.xlu1 %v825_v14 }
  0x2a   :  { %377 = vperm.xlu1 %790, %v866_v1  }
  0x2b   :  { %800 = vset.pattern.permute.xlu0 %v826_v15 }
  0x2c   :  { %657 = vperm.xlu0 %800, %v866_v1  }
  0x2e   :  { %792 = vset.pattern.permute.xlu1 %v827_v16 }
  0x2f   :  { %433 = vperm.xlu1 %792, %v866_v1  }
  0x33   :  { %793 = vset.pattern.permute.xlu1 %v828_v17 }
  0x34   :  { %461 = vperm.xlu1 %793, %v866_v1  }
  0x38   :  { %795 = vset.pattern.permute.xlu1 %v829_v18 }
  0x39   :  { %517 = vperm.xlu1 %795, %v866_v1  }
  0x3d   :  { %796 = vset.pattern.permute.xlu1 %v830_v19 }
  0x3e   :  { %545 = vperm.xlu1 %796, %v866_v1  }
  0x42   :  { %798 = vset.pattern.permute.xlu1 %v831_v20 }
  0x43   :  { %601 = vperm.xlu1 %798, %v866_v1  }
  0x47   :  { %799 = vset.pattern.permute.xlu1 %v832_v21 }
  0x48   :  { %629 = vperm.xlu1 %799, %v866_v1  }
  0x81   :  { %v929_v37 = vpop.permute.xlu0 %265 }
  0x82   :  { %v109_v36 = vpop.permute.xlu1 %108 }
  0x83   :  { %v151_v0 = vmul.f32 %v944_v50, %v109_v36  ;;  %v152_v1 = vmul.f32 %v947_v51, %v109_v36  ;;  %v153_v2 = vmul.f32 %v950_v52, %v109_v36  ;;  %v154_v3 = vmul.f32 %v953_v53, %v109_v36 }
  0x86   :  { %v46_v54 = vpop.permute.xlu0 %45 }
  0x87   :  { %v169_v55 = vpop.permute.xlu1 %168  ;;  %v91_v56 = vmul.f32 %v78_v42, %v46_v54  ;;  %v92_v57 = vmul.f32 %v82_v43, %v46_v54  ;;  %v93_v58 = vmul.f32 %v86_v44, %v46_v54  ;;  %v94_v59 = vmul.f32 %v90_v45, %v46_v54 }
  0x88   :  { %v211_v10 = vmul.f32 %v956_v60, %v169_v55  ;;  %v212_v11 = vmul.f32 %v959_v61, %v169_v55  ;;  %v213_v12 = vmul.f32 %v962_v62, %v169_v55  ;;  %v214_v13 = vmul.f32 %v965_v63, %v169_v55 }
  0x8a   :  { %v28_v4 = vpop.permute.xlu0 %27 }
  0x8b   :  { %v99_v5 = vadd.f32 %v91_v56, %v28_v4  ;;  %v100_v6 = vadd.f32 %v92_v57, %v28_v4  ;;  %v101_v7 = vadd.f32 %v93_v58, %v28_v4  ;;  %v102_v8 = vadd.f32 %v94_v59, %v28_v4 }
  0x8c   :  { %v39_v9 = vpop.permute.xlu1 %38 }
  0x8d   :  { %v159_v14 = vadd.f32 %v151_v0, %v99_v5  ;;  %v160_v15 = vadd.f32 %v152_v1, %v100_v6  ;;  %v161_v16 = vadd.f32 %v153_v2, %v101_v7  ;;  %v162_v17 = vadd.f32 %v154_v3, %v102_v8 }
  0x8e   :  { %v238_v28 = vpop.permute.xlu0 %237 }
  0x8f   :  { %v219_v18 = vadd.f32 %v211_v10, %v159_v14  ;;  %v220_v19 = vadd.f32 %v212_v11, %v160_v15  ;;  %v221_v20 = vadd.f32 %v213_v12, %v161_v16  ;;  %v222_v21 = vadd.f32 %v214_v13, %v162_v17 }
  0x90   :  { %v51_v22 = vpop.permute.xlu1 %50 }
  0x91   :  { %v975_v29 = vmax.f32 %v219_v18, 0.0  ;;  %v977_v30 = vmax.f32 %v220_v19, 0.0  ;;  %v979_v31 = vmax.f32 %v221_v20, 0.0  ;;  %v981_v32 = vmax.f32 %v222_v21, 0.0 }
  0x92   :  { %v95_v40 = vmul.f32 %v78_v42, %v51_v22  ;;  %v96_v41 = vmul.f32 %v82_v43, %v51_v22  ;;  %v97_v46 = vmul.f32 %v86_v44, %v51_v22  ;;  %v98_v47 = vmul.f32 %v90_v45, %v51_v22  ;;  %v33_v57 = vpop.permute.xlu0 %32 }
  0x93   :  { %v243_v33 = vrot.slane %v975_v29, %v902_v24  ;;  %v247_v36 = vrot.slane %v977_v30, %v902_v24  ;;  %v251_v38 = vrot.slane %v979_v31, %v902_v24  ;;  %v255_v39 = vrot.slane %v981_v32, %v902_v24 }
  0x94   :  { %v271_v58 = vrot.slane %v975_v29, %v908_v26  ;;  %v275_v59 = vrot.slane %v977_v30, %v908_v26  ;;  %v279_v0 = vrot.slane %v979_v31, %v908_v26  ;;  %v283_v42 = vrot.slane %v981_v32, %v908_v26 }
  0x95   :  { %v294_v48 = vpop.permute.xlu1 %293  ;;  %v256_v49 = vmul.f32 %v243_v33, %v238_v28  ;;  %v257_v54 = vmul.f32 %v247_v36, %v238_v28  ;;  %v258_v55 = vmul.f32 %v251_v38, %v238_v28  ;;  %v259_v56 = vmul.f32 %v255_v39, %v238_v28 }
  0x96   :  { %v1000_v43 = vsub.s32 3, %v899_v23  ;;  %v1003_v44 = vsub.s32 7, %v899_v23  ;;  %v103_v4 = vadd.f32 %v95_v40, %v33_v57  ;;  %v104_v5 = vadd.f32 %v96_v41, %v33_v57 }
  0x97   :  { %v260_v45 = vadd.f32 %v256_v49, %v39_v9  ;;  %v261_v1 = vadd.f32 %v257_v54, %v39_v9  ;;  %v262_v2 = vadd.f32 %v258_v55, %v39_v9  ;;  %v263_v3 = vadd.f32 %v259_v56, %v39_v9  ;;  %v173_v20 = vpop.permute.xlu0 %172 }
  0x98   :  { %v105_v6 = vadd.f32 %v97_v46, %v33_v57  ;;  %v106_v7 = vadd.f32 %v98_v47, %v33_v57  ;;  %v284_v10 = vmul.f32 %v271_v58, %v929_v37  ;;  %v285_v11 = vmul.f32 %v275_v59, %v929_v37 }
  0x99   :  { %v286_v12 = vmul.f32 %v279_v0, %v929_v37  ;;  %v287_v13 = vmul.f32 %v283_v42, %v929_v37  ;;  %v299_v23 = vrot.slane %v975_v29, %v924_v34  ;;  %v303_v14 = vrot.slane %v977_v30, %v924_v34 }
  0x9a   :  { %v113_v8 = vpop.permute.xlu1 %112  ;;  %v307_v9 = vrot.slane %v979_v31, %v924_v34  ;;  %v311_v15 = vrot.slane %v981_v32, %v924_v34  ;;  %v288_v16 = vadd.f32 %v284_v10, %v260_v45  ;;  %v289_v17 = vadd.f32 %v285_v11, %v261_v1 }
  0x9b   :  { %v290_v18 = vadd.f32 %v286_v12, %v262_v2  ;;  %v291_v19 = vadd.f32 %v287_v13, %v263_v3  ;;  %v215_v21 = vmul.f32 %v956_v60, %v173_v20  ;;  %v216_v37 = vmul.f32 %v959_v61, %v173_v20 }
  0x9c   :  { %v217_v22 = vmul.f32 %v962_v62, %v173_v20  ;;  %v218_v28 = vmul.f32 %v965_v63, %v173_v20  ;;  %v155_v33 = vmul.f32 %v944_v50, %v113_v8  ;;  %v156_v36 = vmul.f32 %v947_v51, %v113_v8 }
  0x9d   :  { %v157_v38 = vmul.f32 %v950_v52, %v113_v8  ;;  %v158_v39 = vmul.f32 %v953_v53, %v113_v8  ;;  %v312_v41 = vmul.f32 %v299_v23, %v294_v48  ;;  %v313_v46 = vmul.f32 %v303_v14, %v294_v48 }
  0x9e   :  { %v314_v47 = vmul.f32 %v307_v9, %v294_v48  ;;  %v315_v49 = vmul.f32 %v311_v15, %v294_v48  ;;  %v163_v60 = vadd.f32 %v155_v33, %v103_v4  ;;  %v164_v54 = vadd.f32 %v156_v36, %v104_v5  ;;  %v406_v4 = vpop.permute.xlu0 %405 }
  0x9f   :  { %v322_v40 = vpop.permute.xlu1 %321  ;;  %v165_v61 = vadd.f32 %v157_v38, %v105_v6  ;;  %v166_v55 = vadd.f32 %v158_v39, %v106_v7  ;;  %v316_v62 = vadd.f32 %v312_v41, %v288_v16  ;;  %v317_v56 = vadd.f32 %v313_v46, %v289_v17 }
  0xa0   :  { %v318_v63 = vadd.f32 %v314_v47, %v290_v18  ;;  %v319_v57 = vadd.f32 %v315_v49, %v291_v19  ;;  %v223_v50 = vadd.f32 %v215_v21, %v163_v60  ;;  %v224_v58 = vadd.f32 %v216_v37, %v164_v54 }
  0xa1   :  { %v225_v51 = vadd.f32 %v217_v22, %v165_v61  ;;  %v226_v59 = vadd.f32 %v218_v28, %v166_v55  ;;  %v327_v52 = vrot.slane %v975_v29, %v1000_v43  ;;  %v331_v53 = vrot.slane %v977_v30, %v1000_v43 }
  0xa2   :  { %v335_v48 = vrot.slane %v979_v31, %v1000_v43  ;;  %v339_v0 = vrot.slane %v981_v32, %v1000_v43  ;;  %v1033_v45 = vmax.f32 %v223_v50, 0.0  ;;  %v1035_v1 = vmax.f32 %v224_v58, 0.0  ;;  %v490_v16 = vpop.permute.xlu0 %489 }
  0xa3   :  { %v1037_v2 = vmax.f32 %v225_v51, 0.0  ;;  %v1039_v3 = vmax.f32 %v226_v59, 0.0  ;;  %v411_v5 = vrot.slane %v975_v29, %v927_v35  ;;  %v415_v6 = vrot.slane %v977_v30, %v927_v35 }
  0xa4   :  { %v350_v42 = vpop.permute.xlu1 %349  ;;  %v419_v7 = vrot.slane %v979_v31, %v927_v35  ;;  %v423_v8 = vrot.slane %v981_v32, %v927_v35  ;;  %v340_v10 = vmul.f32 %v327_v52, %v322_v40  ;;  %v341_v11 = vmul.f32 %v331_v53, %v322_v40 }
  0xa5   :  { %v342_v12 = vmul.f32 %v335_v48, %v322_v40  ;;  %v343_v13 = vmul.f32 %v339_v0, %v322_v40  ;;  %v424_v23 = vmul.f32 %v411_v5, %v406_v4  ;;  %v425_v14 = vmul.f32 %v415_v6, %v406_v4 }
  0xa6   :  { %v426_v9 = vmul.f32 %v419_v7, %v406_v4  ;;  %v427_v15 = vmul.f32 %v423_v8, %v406_v4  ;;  %v495_v17 = vrot.slane %v1033_v45, %v908_v26  ;;  %v499_v18 = vrot.slane %v1035_v1, %v908_v26  ;;  %v574_v50 = vpop.permute.xlu0 %573 }
  0xa7   :  { %v503_v19 = vrot.slane %v1037_v2, %v908_v26  ;;  %v507_v20 = vrot.slane %v1039_v3, %v908_v26  ;;  %v355_v37 = vrot.slane %v975_v29, %v905_v25  ;;  %v359_v22 = vrot.slane %v977_v30, %v905_v25 }
  0xa8   :  { %v363_v28 = vrot.slane %v979_v31, %v905_v25  ;;  %v367_v33 = vrot.slane %v981_v32, %v905_v25  ;;  %v344_v36 = vadd.f32 %v340_v10, %v316_v62  ;;  %v345_v38 = vadd.f32 %v341_v11, %v317_v56 }
  0xa9   :  { %v378_v21 = vpop.permute.xlu1 %377  ;;  %v346_v39 = vadd.f32 %v342_v12, %v318_v63  ;;  %v347_v40 = vadd.f32 %v343_v13, %v319_v57  ;;  %v368_v41 = vmul.f32 %v355_v37, %v350_v42  ;;  %v369_v46 = vmul.f32 %v359_v22, %v350_v42 }
  0xaa   :  { %v370_v26 = vmul.f32 %v363_v28, %v350_v42  ;;  %v371_v47 = vmul.f32 %v367_v33, %v350_v42  ;;  %v1065_v49 = vmul.f32 %v495_v17, %v490_v16  ;;  %v1067_v60 = vmul.f32 %v499_v18, %v490_v16 }
  0xab   :  { %v1069_v54 = vmul.f32 %v503_v19, %v490_v16  ;;  %v1071_v61 = vmul.f32 %v507_v20, %v490_v16  ;;  %v579_v55 = vrot.slane %v1033_v45, %v905_v25  ;;  %v583_v62 = vrot.slane %v1035_v1, %v905_v25 }
  0xac   :  { %v587_v56 = vrot.slane %v1037_v2, %v905_v25  ;;  %v591_v63 = vrot.slane %v1039_v3, %v905_v25  ;;  %v383_v58 = vrot.slane %v975_v29, %v911_v27  ;;  %v387_v51 = vrot.slane %v977_v30, %v911_v27 }
  0xad   :  { %v391_v59 = vrot.slane %v979_v31, %v911_v27  ;;  %v395_v52 = vrot.slane %v981_v32, %v911_v27  ;;  %v372_v53 = vadd.f32 %v368_v41, %v344_v36  ;;  %v373_v48 = vadd.f32 %v369_v46, %v345_v38 }
  0xae   :  { %v434_v57 = vpop.permute.xlu1 %433  ;;  %v374_v0 = vadd.f32 %v370_v26, %v346_v39  ;;  %v375_v42 = vadd.f32 %v371_v47, %v347_v40  ;;  %v396_v4 = vmul.f32 %v383_v58, %v378_v21  ;;  %v397_v25 = vmul.f32 %v387_v51, %v378_v21 }
  0xaf   :  { %v398_v5 = vmul.f32 %v391_v59, %v378_v21  ;;  %v399_v6 = vmul.f32 %v395_v52, %v378_v21  ;;  %v1089_v7 = vmul.f32 %v579_v55, %v574_v50  ;;  %v1091_v8 = vmul.f32 %v583_v62, %v574_v50 }
  0xb0   :  { %v1093_v10 = vmul.f32 %v587_v56, %v574_v50  ;;  %v1095_v11 = vmul.f32 %v591_v63, %v574_v50  ;;  %v400_v12 = vadd.f32 %v396_v4, %v372_v53  ;;  %v401_v13 = vadd.f32 %v397_v25, %v373_v48 }
  0xb1   :  { %v402_v16 = vadd.f32 %v398_v5, %v374_v0  ;;  %v403_v17 = vadd.f32 %v399_v6, %v375_v42  ;;  %v439_v19 = vrot.slane %v975_v29, %v1003_v44  ;;  %v443_v20 = vrot.slane %v977_v30, %v1003_v44 }
  0xb2   :  { %v447_v21 = vrot.slane %v979_v31, %v1003_v44  ;;  %v451_v37 = vrot.slane %v981_v32, %v1003_v44  ;;  %v428_v22 = vadd.f32 %v424_v23, %v400_v12  ;;  %v429_v28 = vadd.f32 %v425_v14, %v401_v13 }
  0xb3   :  { %v462_v18 = vpop.permute.xlu1 %461  ;;  %v430_v33 = vadd.f32 %v426_v9, %v402_v16  ;;  %v431_v36 = vadd.f32 %v427_v15, %v403_v17  ;;  %v452_v38 = vmul.f32 %v439_v19, %v434_v57  ;;  %v453_v39 = vmul.f32 %v443_v20, %v434_v57 }
  0xb4   :  { %v454_v40 = vmul.f32 %v447_v21, %v434_v57  ;;  %v455_v41 = vmul.f32 %v451_v37, %v434_v57  ;;  %v467_v29 = vrot.slane %v1033_v45, %v902_v24  ;;  %v471_v30 = vrot.slane %v1035_v1, %v902_v24 }
  0xb5   :  { %v475_v31 = vrot.slane %v1037_v2, %v902_v24  ;;  %v479_v32 = vrot.slane %v1039_v3, %v902_v24  ;;  %v456_v23 = vadd.f32 %v452_v38, %v428_v22  ;;  %v457_v14 = vadd.f32 %v453_v39, %v429_v28 }
  0xb6   :  { %v458_v9 = vadd.f32 %v454_v40, %v430_v33  ;;  %v459_v15 = vadd.f32 %v455_v41, %v431_v36  ;;  %v480_v26 = vmul.f32 %v467_v29, %v462_v18  ;;  %v481_v47 = vmul.f32 %v471_v30, %v462_v18 }
  0xb7   :  { %v482_v55 = vmul.f32 %v475_v31, %v462_v18  ;;  %v483_v62 = vmul.f32 %v479_v32, %v462_v18  ;;  %v523_v56 = vrot.slane %v1033_v45, %v924_v34  ;;  %v527_v63 = vrot.slane %v1035_v1, %v924_v34 }
  0xb8   :  { %v518_v46 = vpop.permute.xlu1 %517  ;;  %v531_v57 = vrot.slane %v1037_v2, %v924_v34  ;;  %v535_v24 = vrot.slane %v1039_v3, %v924_v34  ;;  %v484_v50 = vadd.f32 %v480_v26, %v456_v23  ;;  %v485_v58 = vadd.f32 %v481_v47, %v457_v14  ;;  %v658_v26 = vpop.permute.xlu0 %657 }
  0xb9   :  { %v486_v51 = vadd.f32 %v482_v55, %v458_v9  ;;  %v487_v59 = vadd.f32 %v483_v62, %v459_v15  ;;  %v536_v52 = vmul.f32 %v523_v56, %v518_v46  ;;  %v537_v53 = vmul.f32 %v527_v63, %v518_v46 }
  0xba   :  { %v538_v48 = vmul.f32 %v531_v57, %v518_v46  ;;  %v539_v0 = vmul.f32 %v535_v24, %v518_v46  ;;  %v512_v42 = vadd.f32 %v1065_v49, %v484_v50  ;;  %v513_v4 = vadd.f32 %v1067_v60, %v485_v58 }
  0xbb   :  { %v514_v25 = vadd.f32 %v1069_v54, %v486_v51  ;;  %v515_v5 = vadd.f32 %v1071_v61, %v487_v59  ;;  %v551_v34 = vrot.slane %v1033_v45, %v1000_v43  ;;  %v555_v12 = vrot.slane %v1035_v1, %v1000_v43 }
  0xbc   :  { %v559_v13 = vrot.slane %v1037_v2, %v1000_v43  ;;  %v563_v16 = vrot.slane %v1039_v3, %v1000_v43  ;;  %v540_v49 = vadd.f32 %v536_v52, %v512_v42  ;;  %v541_v17 = vadd.f32 %v537_v53, %v513_v4 }
  0xbd   :  { %v546_v6 = vpop.permute.xlu1 %545  ;;  %v542_v60 = vadd.f32 %v538_v48, %v514_v25  ;;  %v543_v18 = vadd.f32 %v539_v0, %v515_v5  ;;  %v607_v21 = vrot.slane %v1033_v45, %v911_v27  ;;  %v611_v37 = vrot.slane %v1035_v1, %v911_v27 }
  0xbe   :  { %v564_v54 = vmul.f32 %v551_v34, %v546_v6  ;;  %v565_v19 = vmul.f32 %v555_v12, %v546_v6  ;;  %v566_v61 = vmul.f32 %v559_v13, %v546_v6  ;;  %v567_v20 = vmul.f32 %v563_v16, %v546_v6 }
  0xbf   :  { %v615_v22 = vrot.slane %v1037_v2, %v911_v27  ;;  %v619_v43 = vrot.slane %v1039_v3, %v911_v27  ;;  %v663_v27 = vrot.slane %v1033_v45, %v1003_v44  ;;  %v667_v9 = vrot.slane %v1035_v1, %v1003_v44 }
  0xc0   :  { %v568_v28 = vadd.f32 %v564_v54, %v540_v49  ;;  %v569_v33 = vadd.f32 %v565_v19, %v541_v17  ;;  %v570_v36 = vadd.f32 %v566_v61, %v542_v60  ;;  %v571_v38 = vadd.f32 %v567_v20, %v543_v18 }
  0xc1   :  { %v671_v15 = vrot.slane %v1037_v2, %v1003_v44  ;;  %v675_v46 = vrot.slane %v1039_v3, %v1003_v44  ;;  %v676_v58 = vmul.f32 %v663_v27, %v658_v26 }
  0xc2   :  { %v602_v39 = vpop.permute.xlu1 %601  ;;  %v596_v31 = vadd.f32 %v1089_v7, %v568_v28  ;;  %v597_v32 = vadd.f32 %v1091_v8, %v569_v33  ;;  %v598_v23 = vadd.f32 %v1093_v10, %v570_v36  ;;  %v599_v14 = vadd.f32 %v1095_v11, %v571_v38 }
  0xc3   :  { %v620_v40 = vmul.f32 %v607_v21, %v602_v39  ;;  %v621_v41 = vmul.f32 %v611_v37, %v602_v39  ;;  %v622_v29 = vmul.f32 %v615_v22, %v602_v39  ;;  %v623_v30 = vmul.f32 %v619_v43, %v602_v39 }
  0xc4   :  { %v635_v7 = vrot.slane %v1033_v45, %v927_v35  ;;  %v639_v8 = vrot.slane %v1035_v1, %v927_v35  ;;  %v643_v10 = vrot.slane %v1037_v2, %v927_v35  ;;  %v647_v11 = vrot.slane %v1039_v3, %v927_v35 }
  0xc5   :  { %v624_v55 = vadd.f32 %v620_v40, %v596_v31  ;;  %v625_v62 = vadd.f32 %v621_v41, %v597_v32  ;;  %v626_v56 = vadd.f32 %v622_v29, %v598_v23  ;;  %v627_v63 = vadd.f32 %v623_v30, %v599_v14 }
  0xc6   :  { %v677_v45 = vmul.f32 %v667_v9, %v658_v26  ;;  %v678_v51 = vmul.f32 %v671_v15, %v658_v26  ;;  %v679_v59 = vmul.f32 %v675_v46, %v658_v26 }
  0xc7   :  { %v630_v47 = vpop.permute.xlu1 %629 }
  0xc8   :  { %v648_v57 = vmul.f32 %v635_v7, %v630_v47  ;;  %v649_v44 = vmul.f32 %v639_v8, %v630_v47  ;;  %v650_v24 = vmul.f32 %v643_v10, %v630_v47  ;;  %v651_v50 = vmul.f32 %v647_v11, %v630_v47 }
  0xca   :  { %v652_v1 = vadd.f32 %v648_v57, %v624_v55  ;;  %v653_v52 = vadd.f32 %v649_v44, %v625_v62  ;;  %v654_v53 = vadd.f32 %v650_v24, %v626_v56  ;;  %v655_v2 = vadd.f32 %v651_v50, %v627_v63 }
  0xcc   :  { %v680_v48 = vadd.f32 %v676_v58, %v652_v1  ;;  %v681_v0 = vadd.f32 %v677_v45, %v653_v52  ;;  %v682_v35 = vadd.f32 %v678_v51, %v654_v53  ;;  %v683_v3 = vadd.f32 %v679_v59, %v655_v2 }
  0xce   :  { %v684_v42 = vrot.slane %v680_v48, 4  ;;  %v690_v4 = vrot.slane %v681_v0, 4  ;;  %v696_v25 = vrot.slane %v682_v35, 4  ;;  %v702_v5 = vrot.slane %v683_v3, 4 }
  0xd0   :  { %v685_v6 = vmax.f32 %v680_v48, %v684_v42  ;;  %v691_v34 = vmax.f32 %v681_v0, %v690_v4  ;;  %v697_v12 = vmax.f32 %v682_v35, %v696_v25  ;;  %v703_v13 = vmax.f32 %v683_v3, %v702_v5 }
  0xd2   :  { %v686_v16 = vrot.slane %v685_v6, 2  ;;  %v692_v49 = vrot.slane %v691_v34, 2  ;;  %v698_v17 = vrot.slane %v697_v12, 2  ;;  %v704_v60 = vrot.slane %v703_v13, 2 }
  0xd4   :  { %v687_v18 = vmax.f32 %v685_v6, %v686_v16  ;;  %v693_v54 = vmax.f32 %v691_v34, %v692_v49  ;;  %v699_v19 = vmax.f32 %v697_v12, %v698_v17  ;;  %v705_v61 = vmax.f32 %v703_v13, %v704_v60 }
  0xd6   :  { %v688_v20 = vrot.slane %v687_v18, 1  ;;  %v694_v21 = vrot.slane %v693_v54, 1  ;;  %v700_v37 = vrot.slane %v699_v19, 1  ;;  %v706_v22 = vrot.slane %v705_v61, 1 }
  0xd8   :  { %v689_v43 = vmax.f32 %v687_v18, %v688_v20  ;;  %v695_v28 = vmax.f32 %v693_v54, %v694_v21  ;;  %v701_v33 = vmax.f32 %v699_v19, %v700_v37  ;;  %v707_v36 = vmax.f32 %v705_v61, %v706_v22 }
  0xda   :  { %v708_v38 = vsub.f32 %v680_v48, %v689_v43  ;;  %v709_v39 = vsub.f32 %v681_v0, %v695_v28  ;;  %v710_v40 = vsub.f32 %v682_v35, %v701_v33  ;;  %v711_v41 = vsub.f32 %v683_v3, %v707_v36 }
  0xdc   :  { %v712_v29 = vmul.f32 1.442695, %v708_v38  ;;  %v714_v30 = vmul.f32 1.442695, %v709_v39  ;;  %v716_v31 = vmul.f32 1.442695, %v710_v40 }
  0xdd   :  { %v718_v32 = vmul.f32 1.442695, %v711_v41 }
  0xde   :  { %801 = vpow2.f32 %v712_v29 }
  0xdf   :  { %803 = vpow2.f32 %v714_v30 }
  0xe0   :  { %805 = vpow2.f32 %v716_v31 }
  0xe1   :  { %807 = vpow2.f32 %v718_v32 }
  0xe8   :  { %v802_v23 = vpop.eup %801 }
  0xe9   :  { %v804_v14 = vpop.eup %803  ;;  %v720_v27 = vrot.slane %v802_v23, 4 }
  0xea   :  { %v806_v9 = vpop.eup %805  ;;  %v726_v15 = vrot.slane %v804_v14, 4 }
  0xeb   :  { %v808_v46 = vpop.eup %807  ;;  %v721_v26 = vadd.f32 %v802_v23, %v720_v27  ;;  %v732_v7 = vrot.slane %v806_v9, 4 }
  0xec   :  { %v727_v8 = vadd.f32 %v804_v14, %v726_v15  ;;  %v738_v10 = vrot.slane %v808_v46, 4 }
  0xed   :  { %v722_v11 = vrot.slane %v721_v26, 2  ;;  %v733_v47 = vadd.f32 %v806_v9, %v732_v7 }
  0xee   :  { %v728_v55 = vrot.slane %v727_v8, 2  ;;  %v739_v62 = vadd.f32 %v808_v46, %v738_v10 }
  0xef   :  { %v723_v56 = vadd.f32 %v722_v11, %v721_v26  ;;  %v734_v63 = vrot.slane %v733_v47, 2 }
  0xf0   :  { %v729_v57 = vadd.f32 %v728_v55, %v727_v8  ;;  %v740_v44 = vrot.slane %v739_v62, 2 }
  0xf1   :  { %v724_v24 = vrot.slane %v723_v56, 1  ;;  %v735_v50 = vadd.f32 %v734_v63, %v733_v47 }
  0xf2   :  { %v730_v58 = vrot.slane %v729_v57, 1  ;;  %v741_v45 = vadd.f32 %v740_v44, %v739_v62 }
  0xf3   :  { %v725_v51 = vadd.f32 %v724_v24, %v723_v56  ;;  %v736_v59 = vrot.slane %v735_v50, 1 }
  0xf4   :  { %v731_v1 = vadd.f32 %v730_v58, %v729_v57  ;;  %v742_v52 = vrot.slane %v741_v45, 1 }
  0xf5   :  { %v737_v53 = vadd.f32 %v736_v59, %v735_v50  ;;  %809 = vrcp.f32 %v725_v51 }
  0xf6   :  { %v743_v2 = vadd.f32 %v742_v52, %v741_v45  ;;  %811 = vrcp.f32 %v731_v1 }
  0xf7   :  { %813 = vrcp.f32 %v737_v53 }
  0xf8   :  { %815 = vrcp.f32 %v743_v2 }
  0xff   :  { %v810_v48 = vpop.eup %809 }
 0x100   :  { %v812_v0 = vpop.eup %811  ;;  %v752_v35 = vmul.f32 %v810_v48, %v802_v23 }
 0x101   :  { %v814_v3 = vpop.eup %813  ;;  %v753_v42 = vmul.f32 %v812_v0, %v804_v14 }
 0x102   :  { %v816_v4 = vpop.eup %815  ;;  %v754_v25 = vmul.f32 %v814_v3, %v806_v9  ;;  %756 = vst [vmem:[%s1178_s5] sm:$0xff] %v752_v35 }
 0x103   :  { %v755_v5 = vmul.f32 %v816_v4, %v808_v46  ;;  %757 = vst [vmem:[%s1178_s5 + $0x8] sm:$0xff] %v753_v42 }
 0x104   :  { %758 = vst [vmem:[%s1178_s5 + $0x10] sm:$0xff] %v754_v25 }
 0x105   :  { %759 = vst [vmem:[%s1178_s5 + $0x18] sm:$0xff] %v755_v5 }

</bundles_post_ra>
